<compile_context>
chip_gen: v7x
topology: tpu7x:2x2x1
jax: 0.10.0
libtpu: 0.0.40
codegen_flags: <defaults>
</compile_context>

<pallas_src>
import functools

import jax
import jax.numpy as jnp
from jax import lax
from jax.experimental import pallas as pl
from jax.experimental.pallas import tpu as pltpu

# ----------------------- synthetic model configuration -----------------------
VOCAB = 49408          # CLIP vocab so ref tokens 49406 / 49407 are valid
WIDTH = 32             # text transformer width
MLP_HIDDEN = 4 * WIDTH # 128
EMBED = 16             # joint embedding dim
IMAGE_DIM = 8          # module default 224, shrunk for the synthetic run
TEXT_SEQ_LEN = 8       # module default 77, shrunk
TEXT_REF_LEN = 1
BATCH = 2

OUT_LANES = 128        # lane-dense output slab width (one full vreg lane extent)


# ------------------------------ fused Pallas kernel ---------------------------
def _fused_forward_kernel(
    x0_ref,             # VMEM (tot, W)      f32  : token_emb[ids] + pos (wrapper gather)
    sel_ref,            # VMEM (128, tot)    bf16 : one-hot EOT selector, pad rows zero
    w1_ref,             # VMEM (W, H)        bf16
    w2_ref,             # VMEM (H, W)        bf16
    proj_ref,           # VMEM (W, E)        bf16 : text_projection
    imgflat_ref,        # VMEM (rpad, F)     f32  : flattened images (+zero ref, padded)
    vw_ref,             # VMEM (F, E)        bf16 : visual encoder weight
    small_ref,          # VMEM (8, 128)      f32  : packed b1 / b2 / ln_g / ln_b / vb
    out_ref,            # VMEM (rpad, 128)   f32  : lane-dense score slab
    *, width, hidden, embed, normalize,
):
    bf16 = jnp.bfloat16

    # -- packed small params: one sublane row each, lane-0 aligned static slices --------
    b1   = small_ref[0:1, 0:hidden]
    b2   = small_ref[1:2, 0:width]
    g    = small_ref[2:3, 0:width]
    beta = small_ref[3:4, 0:width]
    vb   = small_ref[4:5, 0:embed]

    # -- text path: residual MLP block (bf16 MXU operands, f32 accumulate/elementwise) --
    x = x0_ref[...]                                                        # (tot, W) f32
    h = jnp.dot(x.astype(bf16), w1_ref[...], preferred_element_type=jnp.float32) + b1
    h = h * jax.nn.sigmoid(1.702 * h)                                      # QuickGELU
    x = x + jnp.dot(h.astype(bf16), w2_ref[...], preferred_element_type=jnp.float32) + b2
    mu = jnp.mean(x, axis=-1, keepdims=True)                               # ln_final
    xc = x - mu
    var = jnp.mean(xc * xc, axis=-1, keepdims=True)
    xn = xc * lax.rsqrt(var + 1e-5) * g + beta                             # (tot, W)

    # -- EOT-token gather as one small one-hot MXU matmul (pad rows of sel are zero) ----
    eot = jnp.dot(sel_ref[...], xn.astype(bf16),
                  preferred_element_type=jnp.float32)                      # (128, W)
    txt = jnp.dot(eot.astype(bf16), proj_ref[...],
                  preferred_element_type=jnp.float32)                      # (128, E)

    # -- image path: flatten-linear visual encoder ---------------------------------------
    img = jnp.dot(imgflat_ref[...].astype(bf16), vw_ref[...],
                  preferred_element_type=jnp.float32) + vb                 # (rpad, E)

    # -- logit_cos: eps-guarded L2 normalize (rsqrt -> EUP) + bf16 cosine matmul ---------
    if normalize:
        img = img * lax.rsqrt(jnp.maximum(
            jnp.sum(img * img, axis=-1, keepdims=True), 1e-12))
        txt = txt * lax.rsqrt(jnp.maximum(
            jnp.sum(txt * txt, axis=-1, keepdims=True), 1e-12))

    # single full-tile unmasked (rpad, 128) store; wrapper slices [:B, :B]
    out_ref[...] = lax.dot_general(
        img.astype(bf16), txt.astype(bf16),
        (((1,), (1,)), ((), ())), preferred_element_type=jnp.float32)


def fused_forward_pallas(params, x0, sel, img_pad, *, normalize):
    """One fused grid-less pallas_call for the whole Explainer forward (toy sizes)."""
    rpad = img_pad.shape[0]
    width = x0.shape[1]
    hidden = params["mlp_w1"].shape[1]
    embed = params["visual_w"].shape[1]

    kern = functools.partial(_fused_forward_kernel, width=width, hidden=hidden,
                             embed=embed, normalize=normalize)
    vmem = pltpu.MemorySpace.VMEM

    return pl.pallas_call(
        kern,
        out_shape=jax.ShapeDtypeStruct((rpad, OUT_LANES), jnp.float32),
        in_specs=[pl.BlockSpec(memory_space=vmem)] * 8,
        out_specs=pl.BlockSpec(memory_space=vmem),
    )(x0, sel, params["mlp_w1"], params["mlp_w2"], params["text_projection"],
      img_pad, params["visual_w"], params["small_params"])


# ------------------------------ forward wrapper --------------------------------
def _forward_impl(params, img_ref, image, text, *, text_ref_len, normalize,
                  scale_cos, itm):
    B, S = text.shape
    # txt-ref row (same as Explainer._make_txt_ref): [SOT, 0, EOT, 0, ...]
    ref_row = jnp.zeros((1, S), jnp.int32)
    ref_row = ref_row.at[0, 0].set(49406).at[0, text_ref_len + 1].set(49407)
    text_full = jnp.concatenate([text.astype(jnp.int32), ref_row], axis=0)   # (B+1, S)

    rows = B + 1
    tot = rows * S
    rpad = max(8, -(-rows // 8) * 8)          # pad rows to a sublane multiple (>= 8)

    # token-embedding gather + positional add, XLA-side (24 rows; fuses into one gather)
    x0 = (params["token_embedding"][text_full]
          + params["positional_embedding"][None, :S, :]).reshape(tot, WIDTH)

    # one-hot EOT selector (OUT_LANES, tot) bf16; rows >= B+1 are zero (pad)
    eot = jnp.argmax(text_full, axis=-1).astype(jnp.int32)                   # text.argmax(-1)
    rowsel = jnp.arange(rows, dtype=jnp.int32) * S + eot                     # flat EOT row idx
    sel = (rowsel[:, None] == jnp.arange(tot, dtype=jnp.int32)[None, :]).astype(jnp.bfloat16)
    sel = jnp.zeros((OUT_LANES, tot), jnp.bfloat16).at[:rows].set(sel)

    # image + zero image-ref, flattened and row-padded
    img_full = jnp.concatenate([image, img_ref], axis=0).reshape(rows, -1)   # (B+1, 3*D*D)
    img_pad = jnp.zeros((rpad, img_full.shape[1]), jnp.float32).at[:rows].set(img_full)

    slab = fused_forward_pallas(params, x0, sel, img_pad, normalize=normalize)
    scores = slab[:B, :B]
    if scale_cos:
        scores = jnp.exp(params["logit_scale"]) * scores
    if itm:
        scalars = jnp.diag(scores)[:, None]
        return scalars @ params["itm_w"] + params["itm_b"]
    return scores, scores.T


# ------------------------------ parameter init --------------------------------
def init_params(key):
    ks = jax.random.split(key, 12)
    f = 3 * IMAGE_DIM * IMAGE_DIM
    bf16 = jnp.bfloat16

    # small per-row params kept f32 (elementwise math stays f32; packing checked by test)
    mlp_b1 = jax.random.normal(ks[6], (1, MLP_HIDDEN), jnp.float32) * 0.02
    mlp_b2 = jax.random.normal(ks[7], (1, WIDTH), jnp.float32) * 0.02
    ln_g = 1.0 + jax.random.normal(ks[8], (1, WIDTH), jnp.float32) * 0.02
    ln_b = jax.random.normal(ks[9], (1, WIDTH), jnp.float32) * 0.02
    vb = jax.random.normal(ks[10], (1, EMBED), jnp.float32) * 0.02

    # pack the five tiny params into one (8,128) f32 slab: one sublane row per param,
    # lane-0 aligned so the kernel reads them with static slices (no lane rotations).
    assert MLP_HIDDEN <= 128 and WIDTH <= 128 and EMBED <= 128
    small = jnp.zeros((8, 128), jnp.float32)
    small = small.at[0, :MLP_HIDDEN].set(mlp_b1[0])
    small = small.at[1, :WIDTH].set(mlp_b2[0])
    small = small.at[2, :WIDTH].set(ln_g[0])
    small = small.at[3, :WIDTH].set(ln_b[0])
    small = small.at[4, :EMBED].set(vb[0])

    return {
        "token_embedding": jax.random.normal(ks[0], (VOCAB, WIDTH), jnp.float32) * 0.02,
        "positional_embedding": jax.random.normal(ks[1], (TEXT_SEQ_LEN, WIDTH), jnp.float32) * 0.01,
        # MXU weights stored bf16 at init (MXU-native; no per-call pack pass)
        "mlp_w1": (jax.random.normal(ks[2], (WIDTH, MLP_HIDDEN), jnp.float32)
                   * (WIDTH ** -0.5)).astype(bf16),
        "mlp_w2": (jax.random.normal(ks[3], (MLP_HIDDEN, WIDTH), jnp.float32)
                   * (MLP_HIDDEN ** -0.5)).astype(bf16),
        "text_projection": (jax.random.normal(ks[4], (WIDTH, EMBED), jnp.float32)
                            * (WIDTH ** -0.5)).astype(bf16),
        "visual_w": (jax.random.normal(ks[5], (f, EMBED), jnp.float32)
                     * (f ** -0.5)).astype(bf16),
        # unpacked copies kept for the pure-JAX reference (not passed to the kernel)
        "mlp_b1": mlp_b1, "mlp_b2": mlp_b2,
        "ln_final_g": ln_g, "ln_final_b": ln_b,
        "visual_b": vb,
        "small_params": small,
        "logit_scale": jnp.asarray(jnp.log(1.0 / 0.07), jnp.float32),
        "itm_w": jax.random.normal(ks[11], (1, 2), jnp.float32) * 0.5,   # Linear(1, 2)
        "itm_b": jnp.zeros((1, 2), jnp.float32),
    }


# ------------------------------ Explainer (JAX) --------------------------------
class ExplainerPallas:
    """encode_image / encode_text / logit_cos are folded into one fused forward kernel."""

    def __init__(self, params, image_dim=IMAGE_DIM, text_seq_len=TEXT_SEQ_LEN,
                 text_ref_len=TEXT_REF_LEN, norm_embeddings=True, scale_cos=False,
                 itm=False, img_ref_type="zeros"):
        self.p = params
        self.image_dim = image_dim
        self.text_seq_len = text_seq_len
        self.text_ref_len = text_ref_len
        self.norm_emb = norm_embeddings
        self.scale_cos = scale_cos
        self.itm = itm
        self.img_ref_type = img_ref_type
        self.txt_ref = self._make_txt_ref()
        self.img_ref = self._make_img_ref()
        self._forward = jax.jit(functools.partial(
            _forward_impl, text_ref_len=text_ref_len, normalize=norm_embeddings,
            scale_cos=scale_cos, itm=itm))

    def _make_txt_ref(self, text_seq_len=None):
        if text_seq_len is None:
            text_seq_len = self.text_seq_len
        assert self.text_ref_len + 1 < text_seq_len, "txt-ref EOT index out of range"
        r = jnp.zeros((1, text_seq_len), jnp.int32)
        r = r.at[0, 0].set(49406)
        r = r.at[0, self.text_ref_len + 1].set(49407)
        return r

    def _make_img_ref(self):
        if self.img_ref_type == "zeros":
            return jnp.zeros((1, 3, self.image_dim, self.image_dim), jnp.float32)
        elif self.img_ref_type == "normal":
            return jax.random.normal(jax.random.PRNGKey(1),
                                     (1, 3, self.image_dim, self.image_dim), jnp.float32)
        raise ValueError(self.img_ref_type)

    def forward(self, image, text):
        return self._forward(self.p, self.img_ref, image, text)


# TODO(synk): explain() / _compute_integrated_jacobian rely on torch.autograd.grad and
# forward hooks; they are an attribution procedure, not part of the forward hot path.

# --------------------------- pure-JAX reference check --------------------------
def reference_forward(expl, image, text):
    """Mirrors the module math and the kernel's bf16-MXU / f32-accumulate policy."""
    p = expl.p
    B, S = text.shape
    bdot = lambda a, w: jnp.dot(a.astype(jnp.bfloat16), w.astype(jnp.bfloat16),
                                preferred_element_type=jnp.float32)
    text_c = jnp.concatenate([text.astype(jnp.int32), expl._make_txt_ref(S)], axis=0)
    x = p["token_embedding"][text_c] + p["positional_embedding"][None, :S, :]
    x2 = x.reshape(-1, x.shape[-1])
    h = bdot(x2, p["mlp_w1"]) + p["mlp_b1"]
    h = h * jax.nn.sigmoid(1.702 * h)
    x2 = x2 + bdot(h, p["mlp_w2"]) + p["mlp_b2"]
    mu = x2.mean(-1, keepdims=True)
    var = ((x2 - mu) ** 2).mean(-1, keepdims=True)
    x2 = (x2 - mu) / jnp.sqrt(var + 1e-5) * p["ln_final_g"] + p["ln_final_b"]
    x = x2.reshape(B + 1, S, -1)
    eot = jnp.argmax(text_c, axis=-1)
    txt_emb = bdot(x[jnp.arange(B + 1), eot], p["text_projection"])[:-1]
    img_c = jnp.concatenate([image, expl.img_ref], axis=0).reshape(B + 1, -1)
    img_emb = (bdot(img_c, p["visual_w"]) + p["visual_b"])[:-1]
    a = img_emb / jnp.linalg.norm(img_emb, axis=1, keepdims=True)
    b = txt_emb / jnp.linalg.norm(txt_emb, axis=1, keepdims=True)
    scores = a @ b.T
    return scores, scores.T


# ------------------------------------ main -------------------------------------
if __name__ == "__main__":
    key = jax.random.PRNGKey(0)
    kp, ki, kt = jax.random.split(key, 3)
    params = init_params(kp)
    expl = ExplainerPallas(params)

    image = jax.random.normal(ki, (BATCH, 3, IMAGE_DIM, IMAGE_DIM), jnp.float32)

    body = jax.random.randint(kt, (BATCH, TEXT_SEQ_LEN), 1, 1000, dtype=jnp.int32)
    text = jnp.zeros((BATCH, TEXT_SEQ_LEN), jnp.int32)
    text = text.at[:, 0].set(49406)           # SOT
    text = text.at[:, 1:5].set(body[:, 1:5])  # some tokens
    text = text.at[:, 5].set(49407)           # EOT (argmax position)

    scores, scores_t = expl.forward(image, text)
    jax.block_until_ready((scores, scores_t))

    ref_scores, ref_scores_t = reference_forward(expl, image, text)

    assert scores.shape == (BATCH, BATCH) and scores_t.shape == (BATCH, BATCH)
    assert bool(jnp.all(jnp.isfinite(scores)))
    assert jnp.allclose(scores, ref_scores, atol=1e-2, rtol=1e-2)
    assert jnp.allclose(scores_t, scores.T)
    print("KERNEL_OK")
</pallas_src>

<mosaic_0001>
module attributes {stable_mosaic.version = 11 : i64} {
  func.func @_fused_forward_kernel(%arg0: memref<24x32xf32, #tpu.memory_space<vmem>>, %arg1: memref<128x24xbf16, #tpu.memory_space<vmem>>, %arg2: memref<32x128xbf16, #tpu.memory_space<vmem>>, %arg3: memref<128x32xbf16, #tpu.memory_space<vmem>>, %arg4: memref<32x16xbf16, #tpu.memory_space<vmem>>, %arg5: memref<8x192xf32, #tpu.memory_space<vmem>>, %arg6: memref<192x16xbf16, #tpu.memory_space<vmem>>, %arg7: memref<8x128xf32, #tpu.memory_space<vmem>>, %arg8: memref<8x128xf32, #tpu.memory_space<vmem>>) attributes {dimension_semantics = [], scalar_prefetch = 0 : i64, scratch_operands = 0 : i64, tpu.core_type = #tpu.core_type<tc>} {
    %c0 = arith.constant 0 : index
    %c0_0 = arith.constant 0 : index
    %0 = vector.load %arg7[%c0, %c0_0] : memref<8x128xf32, #tpu.memory_space<vmem>>, vector<1x128xf32>
    %c1 = arith.constant 1 : index
    %c0_1 = arith.constant 0 : index
    %1 = vector.load %arg7[%c1, %c0_1] : memref<8x128xf32, #tpu.memory_space<vmem>>, vector<1x32xf32>
    %c2 = arith.constant 2 : index
    %c0_2 = arith.constant 0 : index
    %2 = vector.load %arg7[%c2, %c0_2] : memref<8x128xf32, #tpu.memory_space<vmem>>, vector<1x32xf32>
    %c3 = arith.constant 3 : index
    %c0_3 = arith.constant 0 : index
    %3 = vector.load %arg7[%c3, %c0_3] : memref<8x128xf32, #tpu.memory_space<vmem>>, vector<1x32xf32>
    %c4 = arith.constant 4 : index
    %c0_4 = arith.constant 0 : index
    %4 = vector.load %arg7[%c4, %c0_4] : memref<8x128xf32, #tpu.memory_space<vmem>>, vector<1x16xf32>
    %c0_5 = arith.constant 0 : index
    %c0_6 = arith.constant 0 : index
    %5 = vector.load %arg0[%c0_5, %c0_6] : memref<24x32xf32, #tpu.memory_space<vmem>>, vector<24x32xf32>
    %6 = arith.truncf %5 : vector<24x32xf32> to vector<24x32xbf16>
    %c0_7 = arith.constant 0 : index
    %c0_8 = arith.constant 0 : index
    %7 = vector.load %arg2[%c0_7, %c0_8] : memref<32x128xbf16, #tpu.memory_space<vmem>>, vector<32x128xbf16>
    %cst = arith.constant dense<0.000000e+00> : vector<24x128xf32>
    %8 = tpu.matmul %6, %7, %cst {dimension_numbers = #tpu.dot_dimension_numbers<[1], [0], [0], [1], [0, 0, 1, 1], [], []>} : vector<24x32xbf16>, vector<32x128xbf16>, vector<24x128xf32> -> vector<24x128xf32>
    %9 = vector.broadcast %0 : vector<1x128xf32> to vector<24x128xf32>
    %10 = arith.addf %8, %9 : vector<24x128xf32>
    %cst_9 = arith.constant 1.702000e+00 : f32
    %11 = vector.broadcast %cst_9 : f32 to vector<24x128xf32>
    %12 = arith.mulf %11, %10 : vector<24x128xf32>
    %13 = arith.negf %12 : vector<24x128xf32>
    %14 = math.exp %13 : vector<24x128xf32>
    %cst_10 = arith.constant 1.000000e+00 : f32
    %15 = vector.broadcast %cst_10 : f32 to vector<24x128xf32>
    %16 = arith.addf %15, %14 : vector<24x128xf32>
    %17 = arith.divf %15, %16 : vector<24x128xf32>
    %18 = arith.mulf %10, %17 : vector<24x128xf32>
    %19 = arith.truncf %18 : vector<24x128xf32> to vector<24x128xbf16>
    %c0_11 = arith.constant 0 : index
    %c0_12 = arith.constant 0 : index
    %20 = vector.load %arg3[%c0_11, %c0_12] : memref<128x32xbf16, #tpu.memory_space<vmem>>, vector<128x32xbf16>
    %cst_13 = arith.constant dense<0.000000e+00> : vector<24x32xf32>
    %21 = tpu.matmul %19, %20, %cst_13 {dimension_numbers = #tpu.dot_dimension_numbers<[1], [0], [0], [1], [0, 0, 1, 1], [], []>} : vector<24x128xbf16>, vector<128x32xbf16>, vector<24x32xf32> -> vector<24x32xf32>
    %22 = arith.addf %5, %21 : vector<24x32xf32>
    %23 = vector.broadcast %1 : vector<1x32xf32> to vector<24x32xf32>
    %24 = arith.addf %22, %23 : vector<24x32xf32>
    %cst_14 = arith.constant dense<0.000000e+00> : vector<24xf32>
    %25 = vector.multi_reduction <add>, %24, %cst_14 [1] : vector<24x32xf32> to vector<24xf32>
    %26 = vector.shape_cast %25 : vector<24xf32> to vector<24x1xf32>
    %cst_15 = arith.constant 3.200000e+01 : f32
    %27 = vector.broadcast %cst_15 : f32 to vector<24x1xf32>
    %28 = arith.divf %26, %27 : vector<24x1xf32>
    %29 = vector.broadcast %28 : vector<24x1xf32> to vector<24x32xf32>
    %30 = arith.subf %24, %29 : vector<24x32xf32>
    %31 = arith.mulf %30, %30 : vector<24x32xf32>
    %cst_16 = arith.constant dense<0.000000e+00> : vector<24xf32>
    %32 = vector.multi_reduction <add>, %31, %cst_16 [1] : vector<24x32xf32> to vector<24xf32>
    %33 = vector.shape_cast %32 : vector<24xf32> to vector<24x1xf32>
    %cst_17 = arith.constant 3.200000e+01 : f32
    %34 = vector.broadcast %cst_17 : f32 to vector<24x1xf32>
    %35 = arith.divf %33, %34 : vector<24x1xf32>
    %cst_18 = arith.constant 9.99999974E-6 : f32
    %36 = vector.broadcast %cst_18 : f32 to vector<24x1xf32>
    %37 = arith.addf %35, %36 : vector<24x1xf32>
    %38 = math.rsqrt %37 : vector<24x1xf32>
    %39 = vector.broadcast %38 : vector<24x1xf32> to vector<24x32xf32>
    %40 = arith.mulf %30, %39 : vector<24x32xf32>
    %41 = vector.broadcast %2 : vector<1x32xf32> to vector<24x32xf32>
    %42 = arith.mulf %40, %41 : vector<24x32xf32>
    %43 = vector.broadcast %3 : vector<1x32xf32> to vector<24x32xf32>
    %44 = arith.addf %42, %43 : vector<24x32xf32>
    %c0_19 = arith.constant 0 : index
    %c0_20 = arith.constant 0 : index
    %45 = vector.load %arg1[%c0_19, %c0_20] : memref<128x24xbf16, #tpu.memory_space<vmem>>, vector<128x24xbf16>
    %46 = arith.truncf %44 : vector<24x32xf32> to vector<24x32xbf16>
    %cst_21 = arith.constant dense<0.000000e+00> : vector<128x32xf32>
    %47 = tpu.matmul %45, %46, %cst_21 {dimension_numbers = #tpu.dot_dimension_numbers<[1], [0], [0], [1], [0, 0, 1, 1], [], []>} : vector<128x24xbf16>, vector<24x32xbf16>, vector<128x32xf32> -> vector<128x32xf32>
    %48 = arith.truncf %47 : vector<128x32xf32> to vector<128x32xbf16>
    %c0_22 = arith.constant 0 : index
    %c0_23 = arith.constant 0 : index
    %49 = vector.load %arg4[%c0_22, %c0_23] : memref<32x16xbf16, #tpu.memory_space<vmem>>, vector<32x16xbf16>
    %cst_24 = arith.constant dense<0.000000e+00> : vector<128x16xf32>
    %50 = tpu.matmul %48, %49, %cst_24 {dimension_numbers = #tpu.dot_dimension_numbers<[1], [0], [0], [1], [0, 0, 1, 1], [], []>} : vector<128x32xbf16>, vector<32x16xbf16>, vector<128x16xf32> -> vector<128x16xf32>
    %c0_25 = arith.constant 0 : index
    %c0_26 = arith.constant 0 : index
    %51 = vector.load %arg5[%c0_25, %c0_26] : memref<8x192xf32, #tpu.memory_space<vmem>>, vector<8x192xf32>
    %52 = arith.truncf %51 : vector<8x192xf32> to vector<8x192xbf16>
    %c0_27 = arith.constant 0 : index
    %c0_28 = arith.constant 0 : index
    %53 = vector.load %arg6[%c0_27, %c0_28] : memref<192x16xbf16, #tpu.memory_space<vmem>>, vector<192x16xbf16>
    %cst_29 = arith.constant dense<0.000000e+00> : vector<8x16xf32>
    %54 = tpu.matmul %52, %53, %cst_29 {dimension_numbers = #tpu.dot_dimension_numbers<[1], [0], [0], [1], [0, 0, 1, 1], [], []>} : vector<8x192xbf16>, vector<192x16xbf16>, vector<8x16xf32> -> vector<8x16xf32>
    %55 = vector.broadcast %4 : vector<1x16xf32> to vector<8x16xf32>
    %56 = arith.addf %54, %55 : vector<8x16xf32>
    %57 = arith.mulf %56, %56 : vector<8x16xf32>
    %cst_30 = arith.constant dense<0.000000e+00> : vector<8xf32>
    %58 = vector.multi_reduction <add>, %57, %cst_30 [1] : vector<8x16xf32> to vector<8xf32>
    %59 = vector.shape_cast %58 : vector<8xf32> to vector<8x1xf32>
    %cst_31 = arith.constant 9.99999996E-13 : f32
    %60 = vector.broadcast %cst_31 : f32 to vector<8x1xf32>
    %61 = arith.maximumf %59, %60 : vector<8x1xf32>
    %62 = math.rsqrt %61 : vector<8x1xf32>
    %63 = vector.broadcast %62 : vector<8x1xf32> to vector<8x16xf32>
    %64 = arith.mulf %56, %63 : vector<8x16xf32>
    %65 = arith.mulf %50, %50 : vector<128x16xf32>
    %cst_32 = arith.constant dense<0.000000e+00> : vector<128xf32>
    %66 = vector.multi_reduction <add>, %65, %cst_32 [1] : vector<128x16xf32> to vector<128xf32>
    %67 = vector.shape_cast %66 : vector<128xf32> to vector<128x1xf32>
    %cst_33 = arith.constant 9.99999996E-13 : f32
    %68 = vector.broadcast %cst_33 : f32 to vector<128x1xf32>
    %69 = arith.maximumf %67, %68 : vector<128x1xf32>
    %70 = math.rsqrt %69 : vector<128x1xf32>
    %71 = vector.broadcast %70 : vector<128x1xf32> to vector<128x16xf32>
    %72 = arith.mulf %50, %71 : vector<128x16xf32>
    %73 = arith.truncf %64 : vector<8x16xf32> to vector<8x16xbf16>
    %74 = arith.truncf %72 : vector<128x16xf32> to vector<128x16xbf16>
    %cst_34 = arith.constant dense<0.000000e+00> : vector<8x128xf32>
    %75 = tpu.matmul %73, %74, %cst_34 {dimension_numbers = #tpu.dot_dimension_numbers<[1], [1], [0], [0], [0, 0, 1, 0], [], []>} : vector<8x16xbf16>, vector<128x16xbf16>, vector<8x128xf32> -> vector<8x128xf32>
    %c0_35 = arith.constant 0 : index
    %c0_36 = arith.constant 0 : index
    %76 = vector.load %arg8[%c0_35, %c0_36] : memref<8x128xf32, #tpu.memory_space<vmem>>, vector<8x128xf32>
    tpu.vector_store %arg8[%c0_35, %c0_36], %75 {strides = array<i32>} : memref<8x128xf32, #tpu.memory_space<vmem>>, vector<8x128xf32>,
    return
  }
}

</mosaic_0001>

<bundles_post_ra>
// kernel: _forward_impl.1
= control target key start
LH: loop header
LB: loop body
LE: loop exit
PB: predicated region body
PF: predicated region fallthrough
CT: control target
= control target key end

     0   :  { %vm60_vm0 = vcmask 261120   ;;  %vm375_vm1 = vcmask 195584   ;;  %vm400_vm2 = vcmask 1043456   ;;  %vm750_vm3 = vcmask 523264   ;;  %s1608_s2 = inlined_call_operand.vmem [shape: bf16[32,128], index: 2, kind: input, shape index: {}]   ;;  %s1609_s0 = inlined_call_operand.vmem [shape: f32[24,32], index: 0, kind: input, shape index: {}]   ;;  %s1610_s3 = inlined_call_operand.vmem [shape: bf16[128,32], index: 3, kind: input, shape index: {}]   ;;  %s1611_s7 = inlined_call_operand.vmem [shape: f32[8,128], index: 7, kind: input, shape index: {}]   ;;  %s1612_s1 = inlined_call_operand.vmem [shape: bf16[128,24], index: 1, kind: input, shape index: {}]   ;;  %s1613_s6 = inlined_call_operand.vmem [shape: bf16[192,16], index: 6, kind: input, shape index: {}]   ;;  %s1614_s4 = inlined_call_operand.vmem [shape: bf16[32,16], index: 4, kind: input, shape index: {}]   ;;  %s1615_s5 = inlined_call_operand.vmem [shape: f32[8,192], index: 5, kind: input, shape index: {}]   ;;  %s1616_s8 = inlined_call_operand.vmem [shape: f32[8,128], index: 8, kind: output, shape index: {}]  }
   0x1   :  { %v1190_v0 = vld [vmem:[%s1608_s2] sm:$0xff]   ;;  %v1191_v1 = vld [vmem:[%s1608_s2 + $0x8] sm:$0xff]   ;;  %v1341_v4 = vld [vmem:[%s1609_s0 + $0x10] sm:$0xff]  ;;  %vm795_vm4 = vcmask 130048   ;;  %vm1276_vm5 = vmmov 0  }
   0x2   :  { %1098 = vmatprep.subr.bf16.mxu1 %v1190_v0  ;;  %v1331_v2 = vld [vmem:[%s1609_s0] sm:$0xff]  ;;  %v1336_v3 = vld [vmem:[%s1609_s0 + $0x8] sm:$0xff]  ;;  %v39_v6 = vpack.c.bf16 %v1341_v4, %v1341_v4  ;;  %v1194_v9 = vld [vmem:[%s1610_s3 + $0x10] sm:$0xff]  }
   0x3   :  { %1099 = vmatpush3.bf16.msra.mxu1 %v1190_v0  ;;  %v38_v5 = vpack.c.bf16 %v1336_v3, %v1331_v2  ;;  %v1192_v7 = vld [vmem:[%s1610_s3] sm:$0xff]   ;;  %v1193_v8 = vld [vmem:[%s1610_s3 + $0x8] sm:$0xff]   ;;  %v1195_v10 = vld [vmem:[%s1610_s3 + $0x18] sm:$0xff]  }
   0x4   :  { %1100 = vmatprep.subr.bf16.mxu1 %v1191_v1  ;;  %1106 = vmatprep.subr.bf16.mxu0 %v1192_v7  ;;  %v1196_v11 = vld [vmem:[%s1610_s3 + $0x20] sm:$0xff]   ;;  %v1197_v12 = vld [vmem:[%s1610_s3 + $0x28] sm:$0xff]   ;;  %v1198_v13 = vld [vmem:[%s1610_s3 + $0x30] sm:$0xff]  }
   0x5   :  { %1102 = vmatprep.mubr.msk.bf16.mxu1 %vm60_vm0, %v38_v5  ;;  %1107 = vmatpush3.bf16.msra.mxu0 %v1192_v7  ;;  %v1199_v14 = vld [vmem:[%s1610_s3 + $0x38] sm:$0xff]   ;;  %v995_v15 = vld [vmem:[%s1611_s7] ss:$0 sm:$0xff]  ;;  %v1011_v44 = vld [vmem:[%s1611_s7 + $0x1] ss:$0 sm:$0xff] }
   0x6   :  { %1108 = vmatprep.subr.bf16.mxu0 %v1193_v8 }
   0x7   :  { %1101 = vmatpush3.bf16.msra.mxu1 %v1191_v1 }
   0x9   :  { %1109 = vmatpush3.bf16.msra.mxu0 %v1193_v8  ;;  %v1200_v8 = vld [vmem:[%s1612_s1] sm:$0xff]  }
   0xa   :  { %1103 = vmatmul.mubr.msk.bf16.vlgmr.msra.gmra.mrb[0].mxu1 %vm60_vm0, %v39_v6  ;;  %1110 = vmatprep.subr.bf16.mxu0 %v1194_v9 }
   0xd   :  { %1111 = vmatpush3.bf16.msra.mxu0 %v1194_v9  ;;  %v1210_v9 = vld [vmem:[%s1614_s4] sm:$0xff]  }
   0xe   :  { %1112 = vmatprep.subr.bf16.mxu0 %v1195_v10  ;;  %1146 = vmatprep.subr.bf16.mxu1 %v1210_v9 }
   0xf   :  { %1147 = vmatpush3.bf16.msra.mxu1 %v1210_v9 }
  0x11   :  { %1113 = vmatpush3.bf16.msra.mxu0 %v1195_v10 }
  0x12   :  { %1114 = vmatprep.subr.bf16.mxu0 %v1196_v11 }
  0x15   :  { %1115 = vmatpush3.bf16.msra.mxu0 %v1196_v11 }
  0x16   :  { %1116 = vmatprep.subr.bf16.mxu0 %v1197_v12 }
  0x19   :  { %1117 = vmatpush3.bf16.msra.mxu0 %v1197_v12 }
  0x1a   :  { %1118 = vmatprep.subr.bf16.mxu0 %v1198_v13 }
  0x1d   :  { %1119 = vmatpush3.bf16.msra.mxu0 %v1198_v13 }
  0x1e   :  { %1120 = vmatprep.subr.bf16.mxu0 %v1199_v14 }
  0x21   :  { %1121 = vmatpush3.bf16.msra.mxu0 %v1199_v14 }
  0xdd   :  { %v1104_v16 = vpop.f32.mrb[0].mxu1 }
  0xde   :  { %v110_v17 = vadd.f32 %v1104_v16, %v995_v15  ;;  %v101_v18 = vpop.f32.mrb[1].mxu1 }
  0xdf   :  { %v102_v19 = vadd.f32 %v995_v15, %v101_v18  ;;  %v1105_v20 = vpop.f32.mrb[2].mxu1 }
  0xe0   :  { %v1002_v21 = vmul.f32 -1.702, %v110_v17  ;;  %v104_v22 = vpop.f32.mrb[3].mxu1 }
  0xe1   :  { %v1000_v23 = vmul.f32 -1.702, %v102_v19  ;;  %v105_v24 = vadd.f32 %v995_v15, %v104_v22 }
  0xe2   :  { %v125_v25 = vmul.f32 1.442695, %v1002_v21  ;;  %v1012_v21 = vld [vmem:[%s1611_s7 + $0x2] ss:$0 sm:$0xff] }
  0xe3   :  { %v121_v26 = vmul.f32 1.442695, %v1000_v23  ;;  %v1001_v27 = vmul.f32 -1.702, %v105_v24 }
  0xe4   :  { %1222 = vpow2.f32 %v125_v25 }
  0xe5   :  { %1224 = vpow2.f32 %v121_v26  ;;  %v123_v28 = vmul.f32 1.442695, %v1001_v27  ;;  %v1013_v27 = vld [vmem:[%s1611_s7 + $0x3] ss:$0 sm:$0xff] }
  0xe7   :  { %1226 = vpow2.f32 %v123_v28 }
  0xee   :  { %v1223_v29 = vpop.eup %1222 }
  0xef   :  { %v1225_v30 = vpop.eup %1224  ;;  %v129_v31 = vadd.f32 1.0, %v1223_v29 }
  0xf0   :  { %v127_v32 = vadd.f32 1.0, %v1225_v30 }
  0xf1   :  { %v1227_v33 = vpop.eup %1226  ;;  %1228 = vrcp.f32 %v129_v31 }
  0xf2   :  { %1230 = vrcp.f32 %v127_v32  ;;  %v128_v34 = vadd.f32 1.0, %v1227_v33 }
  0xf4   :  { %1232 = vrcp.f32 %v128_v34 }
  0xfb   :  { %v1229_v35 = vpop.eup %1228 }
  0xfc   :  { %v1231_v36 = vpop.eup %1230  ;;  %v138_v38 = vmul.f32 %v1229_v35, %v110_v17 }
  0xfd   :  { %v136_v39 = vmul.f32 %v1231_v36, %v102_v19  ;;  %v1201_v36 = vld [vmem:[%s1612_s1 + $0x8] sm:$0xff]  }
  0xfe   :  { %v1233_v37 = vpop.eup %1232  ;;  %v140_v42 = vpack.c.bf16 %v138_v38, %v138_v38  ;;  %v1208_v38 = vld [vmem:[%s1613_s6] sm:$0xff]  }
  0xff   :  { %v137_v40 = vmul.f32 %v1233_v37, %v105_v24  ;;  %v1202_v37 = vld [vmem:[%s1612_s1 + $0x10] sm:$0xff]  }
 0x101   :  { %v139_v41 = vpack.c.bf16 %v137_v40, %v136_v39  ;;  %v1274_v39 = vmov 0   ;;  %v1209_v40 = vld [vmem:[%s1613_s6 + $0x8] sm:$0xff]  }
 0x103   :  { %1122 = vmatprep.mubr.bf16.mxu0 %v139_v41  ;;  %v1203_v41 = vld [vmem:[%s1612_s1 + $0x18] sm:$0xff]  }
 0x104   :  { %1123 = vmatmul.mubr.bf16.vlgmr.msra.gmra.mrb[0].mxu0 %v140_v42  ;;  %v1204_v42 = vld [vmem:[%s1612_s1 + $0x20] sm:$0xff]  }
 0x105   :  { %1130 = vmatprep.mubr.msk.bf16.mxu0 %vm375_vm1, %v1200_v8 }
 0x1d7   :  { %v1124_v43 = vpop.f32.mrb[0].mxu0 }
 0x1d8   :  { %v255_v45 = vadd.f32 %v1124_v43, %v1341_v4  ;;  %v239_v46 = vpop.f32.mrb[1].mxu0  ;;  %v1211_v43 = vld [vmem:[%s1613_s6 + $0x10] sm:$0xff]  }
 0x1d9   :  { %v253_v47 = vadd.f32 %v239_v46, %v1331_v2  ;;  %v1125_v48 = vpop.f32.mrb[2].mxu0  ;;  %v1207_v46 = vld [vmem:[%s1612_s1 + $0x38] sm:$0xff]  }
 0x1da   :  { %v242_v49 = vpop.f32.mrb[3].mxu0  ;;  %v262_v50 = vadd.f32 %v1011_v44, %v255_v45  ;;  %v1206_v45 = vld [vmem:[%s1612_s1 + $0x30] sm:$0xff]   ;;  %v1213_v48 = vld [vmem:[%s1613_s6 + $0x18] sm:$0xff]  }
 0x1db   :  { %v254_v51 = vadd.f32 %v242_v49, %v1336_v3  ;;  %v260_v52 = vadd.f32 %v1011_v44, %v253_v47  ;;  %v1212_v47 = vld [vmem:[%s1614_s4 + $0x8] sm:$0xff]   ;;  %v1214_v49 = vld [vmem:[%s1613_s6 + $0x20] sm:$0xff]  }
 0x1dc   :  { %v269_v53 = vsel %vm60_vm0, %v262_v50, 0.0  ;;  %1148 = vmatprep.subr.bf16.mxu1 %v1212_v47 }
 0x1dd   :  { %270 = vadd.xlane.f32.xlu1 %v269_v53  ;;  %v263_v54 = vsel %vm60_vm0, %v260_v52, 0.0  ;;  %v261_v55 = vadd.f32 %v1011_v44, %v254_v51  ;;  %v1205_v44 = vld [vmem:[%s1612_s1 + $0x28] sm:$0xff]   ;;  %1149 = vmatpush3.bf16.msra.mxu1 %v1212_v47  ;;  %v1216_v51 = vld [vmem:[%s1613_s6 + $0x30] sm:$0xff]   ;;  %v1218_v53 = vld [vmem:[%s1613_s6 + $0x40] sm:$0xff]  }
 0x1de   :  { %264 = vadd.xlane.f32.xlu0 %v263_v54  ;;  %v1219_v54 = vld [vmem:[%s1613_s6 + $0x48] sm:$0xff]  }
 0x1df   :  { %v266_v56 = vsel %vm60_vm0, %v261_v55, 0.0 }
 0x1e2   :  { %267 = vadd.xlane.f32.xlu0 %v266_v56  ;;  %v1221_v56 = vld [vmem:[%s1613_s6 + $0x58] sm:$0xff]  }
 0x26a   :  { %v271_v57 = vpop.xlane.xlu1 %270 }
 0x26b   :  { %v275_v58 = vmul.f32 0.03125, %v271_v57  ;;  %v265_v59 = vpop.xlane.xlu0 %264  ;;  %v646_v57 = vld [vmem:[%s1615_s5] sm:$0xff] }
 0x26c   :  { %v273_v60 = vmul.f32 0.03125, %v265_v59 }
 0x26d   :  { %v278_v61 = vsub.f32 %v262_v50, %v275_v58  ;;  %v1215_v50 = vld [vmem:[%s1613_s6 + $0x28] sm:$0xff]  }
 0x26e   :  { %v276_v62 = vsub.f32 %v260_v52, %v273_v60  ;;  %v1217_v52 = vld [vmem:[%s1613_s6 + $0x38] sm:$0xff]   ;;  %v647_v58 = vld [vmem:[%s1615_s5 + $0x8] sm:$0xff]  ;;  %v648_v60 = vpack.c.bf16 %v646_v57, %v646_v57 }
 0x26f   :  { %v268_v63 = vpop.xlane.xlu0 %267  ;;  %v281_v4 = vmul.f32 %v278_v61, %v278_v61  ;;  %v649_v59 = vpack.c.bf16 %v647_v58, %v647_v58 }
 0x270   :  { %v274_v0 = vmul.f32 0.03125, %v268_v63  ;;  %v279_v1 = vmul.f32 %v276_v62, %v276_v62 }
 0x271   :  { %v288_v6 = vsel %vm60_vm0, %v281_v4, 0.0 }
 0x272   :  { %v277_v2 = vsub.f32 %v261_v55, %v274_v0  ;;  %v282_v3 = vsel %vm60_vm0, %v279_v1, 0.0  ;;  %v1220_v55 = vld [vmem:[%s1613_s6 + $0x50] sm:$0xff]  }
 0x273   :  { %283 = vadd.xlane.f32.xlu1 %v282_v3 }
 0x274   :  { %v280_v5 = vmul.f32 %v277_v2, %v277_v2 }
 0x276   :  { %v285_v7 = vsel %vm60_vm0, %v280_v5, 0.0 }
 0x277   :  { %289 = vadd.xlane.f32.xlu1 %v288_v6  ;;  %286 = vadd.xlane.f32.xlu0 %v285_v7 }
 0x300   :  { %v284_v10 = vpop.xlane.xlu1 %283 }
 0x301   :  { %v291_v11 = vmul.f32 0.03125, %v284_v10 }
 0x303   :  { %v294_v12 = vadd.f32 1e-05, %v291_v11 }
 0x304   :  { %v290_v13 = vpop.xlane.xlu1 %289  ;;  %v287_v14 = vpop.xlane.xlu0 %286 }
 0x305   :  { %1234 = vrsqrt.f32 %v294_v12  ;;  %v293_v15 = vmul.f32 0.03125, %v290_v13  ;;  %v292_v16 = vmul.f32 0.03125, %v287_v14 }
 0x307   :  { %v296_v17 = vadd.f32 1e-05, %v293_v15  ;;  %v295_v18 = vadd.f32 1e-05, %v292_v16 }
 0x309   :  { %1236 = vrsqrt.f32 %v296_v17 }
 0x30a   :  { %1238 = vrsqrt.f32 %v295_v18 }
 0x30f   :  { %v1235_v19 = vpop.eup %1234 }
 0x310   :  { %v300_v20 = vmul.f32 %v1235_v19, %v276_v62 }
 0x312   :  { %v307_v26 = vmul.f32 %v1012_v21, %v300_v20 }
 0x313   :  { %v1237_v22 = vpop.eup %1236 }
 0x314   :  { %v1239_v23 = vpop.eup %1238  ;;  %v302_v24 = vmul.f32 %v1237_v22, %v278_v61  ;;  %v314_v30 = vadd.f32 %v1013_v27, %v307_v26 }
 0x315   :  { %v301_v25 = vmul.f32 %v1239_v23, %v277_v2 }
 0x316   :  { %v309_v28 = vmul.f32 %v1012_v21, %v302_v24 }
 0x317   :  { %v308_v29 = vmul.f32 %v1012_v21, %v301_v25 }
 0x318   :  { %v316_v32 = vadd.f32 %v1013_v27, %v309_v28 }
 0x319   :  { %v315_v31 = vadd.f32 %v1013_v27, %v308_v29 }
 0x31a   :  { %v334_v34 = vpack.c.bf16 %v316_v32, %v316_v32 }
 0x31b   :  { %v333_v33 = vpack.c.bf16 %v315_v31, %v314_v30 }
 0x31c   :  { %v402_v35 = vsel %vm400_vm2, %v334_v34, 0 }
 0x31d   :  { %1126 = vmatprep.subr.bf16.mxu0 %v333_v33 }
 0x31e   :  { %1127 = vmatpush3.bf16.msra.mxu0 %v333_v33 }
 0x31f   :  { %1186 = vmatprep.subr.msk.bf16.mxu0 %vm400_vm2, %v334_v34 }
 0x322   :  { %1129 = vmatpush3.bf16.msra.mxu0 %v402_v35 }
 0x323   :  { %754 = vmatprep.subr.bf16.mxu0 %v1274_v39 }
 0x325   :  { %1131 = vmatmul.mubr.msk.bf16.vlgmr.msra.gmra.mrb[4].mxu0 %vm375_vm1, %v1201_v36 }
 0x326   :  { %1134 = vmatprep.mubr.msk.bf16.mxu0 %vm375_vm1, %v1202_v37  ;;  %755 = vmatpush1.bf16.msra.mxu0 %v1208_v38 }
 0x327   :  { %756 = vmatprep.subr.bf16.mxu0 %v1274_v39 }
 0x32a   :  { %757 = vmatpush1.bf16.msra.mxu0 %v1209_v40 }
 0x32b   :  { %758 = vmatprep.subr.bf16.mxu0 %v1274_v39 }
 0x32d   :  { %1135 = vmatmul.mubr.msk.bf16.gmra.mrb[8].mxu0 %vm375_vm1, %v1203_v41 }
 0x32e   :  { %1138 = vmatprep.mubr.msk.bf16.mxu0 %vm375_vm1, %v1204_v42  ;;  %759 = vmatpush1.bf16.msra.mxu0 %v1211_v43 }
 0x32f   :  { %760 = vmatprep.subr.bf16.mxu0 %v1274_v39 }
 0x332   :  { %761 = vmatpush1.bf16.msra.mxu0 %v1213_v48 }
 0x333   :  { %762 = vmatprep.subr.bf16.mxu0 %v1274_v39 }
 0x335   :  { %1139 = vmatmul.mubr.msk.bf16.gmra.mrb[12].mxu0 %vm375_vm1, %v1205_v44 }
 0x336   :  { %1142 = vmatprep.mubr.msk.bf16.mxu0 %vm375_vm1, %v1206_v45  ;;  %763 = vmatpush1.bf16.msra.mxu0 %v1214_v49 }
 0x337   :  { %764 = vmatprep.subr.bf16.mxu0 %v1274_v39 }
 0x33a   :  { %765 = vmatpush1.bf16.msra.mxu0 %v1215_v50 }
 0x33b   :  { %766 = vmatprep.subr.bf16.mxu0 %v1274_v39 }
 0x33d   :  { %1143 = vmatmul.mubr.msk.bf16.gmra.mrb[16].mxu0 %vm375_vm1, %v1207_v46 }
 0x33e   :  { %767 = vmatpush1.bf16.msra.mxu0 %v1216_v51  ;;  %1053 = vmatprep.mubr.msk.bf16.mxu0 %vm750_vm3, %v649_v59 }
 0x33f   :  { %768 = vmatprep.subr.bf16.mxu0 %v1274_v39 }
 0x342   :  { %769 = vmatpush1.bf16.msra.mxu0 %v1217_v52 }
 0x343   :  { %770 = vmatprep.subr.bf16.mxu0 %v1274_v39 }
 0x346   :  { %771 = vmatpush1.bf16.msra.mxu0 %v1218_v53 }
 0x347   :  { %772 = vmatprep.subr.bf16.mxu0 %v1274_v39 }
 0x34a   :  { %773 = vmatpush1.bf16.msra.mxu0 %v1219_v54 }
 0x34b   :  { %774 = vmatprep.subr.bf16.mxu0 %v1274_v39 }
 0x34e   :  { %775 = vmatpush1.bf16.msra.mxu0 %v1220_v55 }
 0x34f   :  { %776 = vmatprep.subr.bf16.mxu0 %v1274_v39 }
 0x352   :  { %777 = vmatpush1.bf16.msra.mxu0 %v1221_v56 }
 0x355   :  { %787 = vmatmul.mubr.bf16.vlgmr.msra.gmra.mrb[20].mxu0 %v648_v60  ;;  %v1040_v60 = vld [vmem:[%s1611_s7 + $0x4] ss:$0 sm:$0xff] }
 0x3f8   :  { %v1132_v61 = vpop.f32.mrb[4].mxu0 }
 0x3f9   :  { %v438_v62 = vpop.f32.mrb[5].mxu0 }
 0x3fa   :  { %v1133_v63 = vpop.f32.mrb[6].mxu0 }
 0x3fb   :  { %v502_v0 = vpack.c.bf16 %v1133_v63, %v1132_v61  ;;  %v441_v1 = vpop.f32.mrb[7].mxu0 }
 0x3fc   :  { %v501_v2 = vpack.c.bf16 %v441_v1, %v438_v62 }
 0x3fe   :  { %1150 = vmatprep.mubr.msk.bf16.mxu1 %vm60_vm0, %v501_v2 }
 0x3ff   :  { %1151 = vmatmul.mubr.msk.bf16.vlgmr.msra.gmra.mrb[4].mxu1 %vm60_vm0, %v502_v0 }
 0x400   :  { %v1136_v3 = vpop.f32.mrb[8].mxu0 }
 0x401   :  { %v454_v4 = vpop.f32.mrb[9].mxu0 }
 0x402   :  { %v1137_v5 = vpop.f32.mrb[10].mxu0 }
 0x403   :  { %v504_v6 = vpack.c.bf16 %v1137_v5, %v1136_v3  ;;  %v457_v7 = vpop.f32.mrb[11].mxu0 }
 0x404   :  { %v503_v8 = vpack.c.bf16 %v457_v7, %v454_v4 }
 0x406   :  { %1154 = vmatprep.mubr.msk.bf16.mxu1 %vm60_vm0, %v503_v8 }
 0x407   :  { %1155 = vmatmul.mubr.msk.bf16.gmra.mrb[8].mxu1 %vm60_vm0, %v504_v6 }
 0x408   :  { %v1140_v9 = vpop.f32.mrb[12].mxu0 }
 0x409   :  { %v470_v10 = vpop.f32.mrb[13].mxu0 }
 0x40a   :  { %v1141_v11 = vpop.f32.mrb[14].mxu0 }
 0x40b   :  { %v506_v12 = vpack.c.bf16 %v1141_v11, %v1140_v9  ;;  %v473_v13 = vpop.f32.mrb[15].mxu0 }
 0x40c   :  { %v505_v14 = vpack.c.bf16 %v473_v13, %v470_v10  ;;  %v1275_v13 = vmov 0.0  }
 0x40d   :  { %1166 = vmatprep.subr.bf16.mxu1 %v1275_v13 }
 0x40e   :  { %1158 = vmatprep.mubr.msk.bf16.mxu1 %vm60_vm0, %v505_v14 }
 0x40f   :  { %1159 = vmatmul.mubr.msk.bf16.gmra.mrb[12].mxu1 %vm60_vm0, %v506_v12 }
 0x410   :  { %v1144_v15 = vpop.f32.mrb[16].mxu0 }
 0x411   :  { %v486_v16 = vpop.f32.mrb[17].mxu0 }
 0x412   :  { %v1145_v17 = vpop.f32.mrb[18].mxu0 }
 0x413   :  { %v508_v18 = vpack.c.bf16 %v1145_v17, %v1144_v15  ;;  %v489_v19 = vpop.f32.mrb[19].mxu0 }
 0x414   :  { %v507_v20 = vpack.c.bf16 %v489_v19, %v486_v16 }
 0x416   :  { %1162 = vmatprep.mubr.msk.bf16.mxu1 %vm60_vm0, %v507_v20 }
 0x417   :  { %1163 = vmatmul.mubr.msk.bf16.gmra.mrb[16].mxu1 %vm60_vm0, %v508_v18 }
 0x418   :  { %1182 = vmatprep.mubr.msk.bf16.mxu1 %vm1276_vm5, %v1275_v13 }
 0x428   :  { %v788_v21 = vpop.f32.mrb[20].mxu0 }
 0x429   :  { %v790_v22 = vpop.f32.mrb[21].mxu0  ;;  %v1555_v3 = vadd.f32 %v1040_v60, %v788_v21 }
 0x42a   :  { %v791_v23 = vpop.f32.mrb[22].mxu0 }
 0x42b   :  { %v792_v24 = vpop.f32.mrb[23].mxu0  ;;  %v794_v10 = vmul.f32 %v1555_v3, %v1555_v3 }
 0x42d   :  { %v796_v12 = vsel %vm795_vm4, %v794_v10, 0.0 }
 0x4d2   :  { %v1482_v25 = vpop.f32.mrb[4].mxu1 }
 0x4d3   :  { %v1484_v26 = vpop.f32.mrb[5].mxu1  ;;  %v804_v30 = vmul.f32 %v1482_v25, %v1482_v25 }
 0x4d4   :  { %v802_v27 = vmul.f32 %v1484_v26, %v1484_v26  ;;  %v1488_v28 = vpop.f32.mrb[6].mxu1 }
 0x4d5   :  { %v1490_v29 = vpop.f32.mrb[7].mxu1  ;;  %v805_v33 = vmul.f32 %v1488_v28, %v1488_v28  ;;  %v824_v36 = vsel %vm795_vm4, %v804_v30, 0.0 }
 0x4d6   :  { %v803_v31 = vmul.f32 %v1490_v29, %v1490_v29  ;;  %v818_v32 = vsel %vm795_vm4, %v802_v27, 0.0 }
 0x4d7   :  { %819 = vadd.xlane.f32.xlu0 %v818_v32  ;;  %v827_v41 = vsel %vm795_vm4, %v805_v33, 0.0 }
 0x4d8   :  { %v821_v34 = vsel %vm795_vm4, %v803_v31, 0.0 }
 0x4d9   :  { %822 = vadd.xlane.f32.xlu1 %v821_v34 }
 0x4da   :  { %v1500_v35 = vpop.f32.mrb[8].mxu1 }
 0x4db   :  { %825 = vadd.xlane.f32.xlu0 %v824_v36  ;;  %v1503_v37 = vpop.f32.mrb[9].mxu1  ;;  %v808_v38 = vmul.f32 %v1500_v35, %v1500_v35 }
 0x4dc   :  { %v806_v39 = vmul.f32 %v1503_v37, %v1503_v37  ;;  %v1509_v40 = vpop.f32.mrb[10].mxu1 }
 0x4dd   :  { %828 = vadd.xlane.f32.xlu1 %v827_v41  ;;  %v1512_v42 = vpop.f32.mrb[11].mxu1  ;;  %v809_v45 = vmul.f32 %v1509_v40, %v1509_v40  ;;  %v836_v47 = vsel %vm795_vm4, %v808_v38, 0.0 }
 0x4de   :  { %v807_v43 = vmul.f32 %v1512_v42, %v1512_v42  ;;  %v830_v44 = vsel %vm795_vm4, %v806_v39, 0.0 }
 0x4df   :  { %831 = vadd.xlane.f32.xlu0 %v830_v44  ;;  %v839_v53 = vsel %vm795_vm4, %v809_v45, 0.0 }
 0x4e0   :  { %v833_v46 = vsel %vm795_vm4, %v807_v43, 0.0 }
 0x4e1   :  { %834 = vadd.xlane.f32.xlu1 %v833_v46 }
 0x4e2   :  { %v1521_v48 = vpop.f32.mrb[12].mxu1 }
 0x4e3   :  { %837 = vadd.xlane.f32.xlu0 %v836_v47  ;;  %v1523_v49 = vpop.f32.mrb[13].mxu1  ;;  %v812_v50 = vmul.f32 %v1521_v48, %v1521_v48 }
 0x4e4   :  { %v810_v51 = vmul.f32 %v1523_v49, %v1523_v49  ;;  %v1529_v52 = vpop.f32.mrb[14].mxu1 }
 0x4e5   :  { %840 = vadd.xlane.f32.xlu1 %v839_v53  ;;  %v1532_v54 = vpop.f32.mrb[15].mxu1  ;;  %v813_v55 = vmul.f32 %v1529_v52, %v1529_v52  ;;  %v848_v59 = vsel %vm795_vm4, %v812_v50, 0.0 }
 0x4e6   :  { %v811_v56 = vmul.f32 %v1532_v54, %v1532_v54  ;;  %v842_v57 = vsel %vm795_vm4, %v810_v51, 0.0 }
 0x4e7   :  { %843 = vadd.xlane.f32.xlu0 %v842_v57  ;;  %v851_v62 = vsel %vm795_vm4, %v813_v55, 0.0 }
 0x4e8   :  { %v845_v58 = vsel %vm795_vm4, %v811_v56, 0.0 }
 0x4e9   :  { %846 = vadd.xlane.f32.xlu1 %v845_v58 }
 0x4ea   :  { %v1544_v61 = vpop.f32.mrb[16].mxu1 }
 0x4eb   :  { %849 = vadd.xlane.f32.xlu0 %v848_v59  ;;  %v1547_v63 = vpop.f32.mrb[17].mxu1  ;;  %v816_v0 = vmul.f32 %v1544_v61, %v1544_v61 }
 0x4ec   :  { %v814_v1 = vmul.f32 %v1547_v63, %v1547_v63  ;;  %v1553_v2 = vpop.f32.mrb[18].mxu1 }
 0x4ed   :  { %852 = vadd.xlane.f32.xlu1 %v851_v62  ;;  %v1557_v4 = vpop.f32.mrb[19].mxu1  ;;  %v817_v5 = vmul.f32 %v1553_v2, %v1553_v2  ;;  %v860_v9 = vsel %vm795_vm4, %v816_v0, 0.0 }
 0x4ee   :  { %v815_v6 = vmul.f32 %v1557_v4, %v1557_v4  ;;  %v854_v7 = vsel %vm795_vm4, %v814_v1, 0.0 }
 0x4ef   :  { %855 = vadd.xlane.f32.xlu0 %v854_v7  ;;  %v863_v11 = vsel %vm795_vm4, %v817_v5, 0.0 }
 0x4f0   :  { %v857_v8 = vsel %vm795_vm4, %v815_v6, 0.0 }
 0x4f1   :  { %858 = vadd.xlane.f32.xlu1 %v857_v8 }
 0x4f3   :  { %861 = vadd.xlane.f32.xlu0 %v860_v9 }
 0x4f5   :  { %864 = vadd.xlane.f32.xlu1 %v863_v11 }
 0x4f7   :  { %797 = vadd.xlane.f32.xlu0 %v796_v12 }
 0x564   :  { %v820_v14 = vpop.xlane.xlu0 %819 }
 0x565   :  { %v866_v15 = vmax.f32 %v820_v14, 1e-12 }
 0x566   :  { %v823_v16 = vpop.xlane.xlu1 %822 }
 0x567   :  { %1240 = vrsqrt.f32 %v866_v15  ;;  %v867_v17 = vmax.f32 %v823_v16, 1e-12 }
 0x568   :  { %v826_v18 = vpop.xlane.xlu0 %825 }
 0x569   :  { %1242 = vrsqrt.f32 %v867_v17  ;;  %v868_v19 = vmax.f32 %v826_v18, 1e-12 }
 0x56a   :  { %v829_v20 = vpop.xlane.xlu1 %828 }
 0x56b   :  { %1244 = vrsqrt.f32 %v868_v19  ;;  %v869_v21 = vmax.f32 %v829_v20, 1e-12 }
 0x56c   :  { %v832_v22 = vpop.xlane.xlu0 %831 }
 0x56d   :  { %1246 = vrsqrt.f32 %v869_v21  ;;  %v870_v23 = vmax.f32 %v832_v22, 1e-12 }
 0x56e   :  { %v835_v24 = vpop.xlane.xlu1 %834 }
 0x56f   :  { %1248 = vrsqrt.f32 %v870_v23  ;;  %v871_v27 = vmax.f32 %v835_v24, 1e-12 }
 0x570   :  { %v838_v30 = vpop.xlane.xlu0 %837 }
 0x571   :  { %v1241_v31 = vpop.eup %1240  ;;  %1250 = vrsqrt.f32 %v871_v27  ;;  %v872_v32 = vmax.f32 %v838_v30, 1e-12 }
 0x572   :  { %v841_v33 = vpop.xlane.xlu1 %840  ;;  %v898_v39 = vmul.f32 %v1241_v31, %v1484_v26 }
 0x573   :  { %v1243_v34 = vpop.eup %1242  ;;  %1252 = vrsqrt.f32 %v872_v32  ;;  %v873_v36 = vmax.f32 %v841_v33, 1e-12 }
 0x574   :  { %v844_v38 = vpop.xlane.xlu0 %843  ;;  %v899_v41 = vmul.f32 %v1243_v34, %v1490_v29 }
 0x575   :  { %v1245_v43 = vpop.eup %1244  ;;  %1254 = vrsqrt.f32 %v873_v36  ;;  %v874_v44 = vmax.f32 %v844_v38, 1e-12 }
 0x576   :  { %v847_v45 = vpop.xlane.xlu1 %846  ;;  %v915_v46 = vpack.c.bf16 %v899_v41, %v898_v39  ;;  %v900_v55 = vmul.f32 %v1245_v43, %v1482_v25 }
 0x577   :  { %v1247_v47 = vpop.eup %1246  ;;  %1256 = vrsqrt.f32 %v874_v44  ;;  %v875_v50 = vmax.f32 %v847_v45, 1e-12 }
 0x578   :  { %v850_v51 = vpop.xlane.xlu0 %849  ;;  %v927_v53 = vsel %vm795_vm4, %v915_v46, 0  ;;  %v901_v56 = vmul.f32 %v1247_v47, %v1488_v28 }
 0x579   :  { %v1249_v57 = vpop.eup %1248  ;;  %1258 = vrsqrt.f32 %v875_v50  ;;  %v876_v26 = vmax.f32 %v850_v51, 1e-12  ;;  %1167 = vmatpush3.bf16.xpose.msra.mxu1 %v927_v53 }
 0x57a   :  { %v853_v29 = vpop.xlane.xlu1 %852  ;;  %1168 = vmatprep.subr.bf16.mxu1 %v1275_v13  ;;  %v916_v58 = vpack.c.bf16 %v901_v56, %v900_v55  ;;  %v902_v0 = vmul.f32 %v1249_v57, %v1503_v37 }
 0x57b   :  { %v1251_v59 = vpop.eup %1250  ;;  %1260 = vrsqrt.f32 %v876_v26  ;;  %v877_v60 = vmax.f32 %v853_v29, 1e-12 }
 0x57c   :  { %v856_v62 = vpop.xlane.xlu0 %855  ;;  %v903_v1 = vmul.f32 %v1251_v59, %v1512_v42  ;;  %v930_v10 = vsel %vm795_vm4, %v916_v58, 0 }
 0x57d   :  { %v1253_v5 = vpop.eup %1252  ;;  %1262 = vrsqrt.f32 %v877_v60  ;;  %v878_v25 = vmax.f32 %v856_v62, 1e-12 }
 0x57e   :  { %v859_v28 = vpop.xlane.xlu1 %858  ;;  %v917_v6 = vpack.c.bf16 %v903_v1, %v902_v0  ;;  %v904_v11 = vmul.f32 %v1253_v5, %v1500_v35 }
 0x57f   :  { %v1255_v7 = vpop.eup %1254  ;;  %1264 = vrsqrt.f32 %v878_v25  ;;  %v879_v8 = vmax.f32 %v859_v28, 1e-12 }
 0x580   :  { %v862_v9 = vpop.xlane.xlu0 %861  ;;  %v905_v12 = vmul.f32 %v1255_v7, %v1509_v40  ;;  %v933_v40 = vsel %vm795_vm4, %v917_v6, 0 }
 0x581   :  { %v1257_v14 = vpop.eup %1256  ;;  %1266 = vrsqrt.f32 %v879_v8  ;;  %v880_v37 = vmax.f32 %v862_v9, 1e-12  ;;  %1169 = vmatpush3.bf16.xpose.msra.mxu1 %v930_v10 }
 0x582   :  { %v865_v42 = vpop.xlane.xlu1 %864  ;;  %1170 = vmatprep.subr.bf16.mxu1 %v1275_v13  ;;  %v918_v15 = vpack.c.bf16 %v905_v12, %v904_v11  ;;  %v906_v18 = vmul.f32 %v1257_v14, %v1523_v49 }
 0x583   :  { %v1259_v16 = vpop.eup %1258  ;;  %1268 = vrsqrt.f32 %v880_v37  ;;  %v881_v17 = vmax.f32 %v865_v42, 1e-12 }
 0x584   :  { %v907_v19 = vmul.f32 %v1259_v16, %v1532_v54  ;;  %v936_v34 = vsel %vm795_vm4, %v918_v15, 0 }
 0x585   :  { %v1261_v20 = vpop.eup %1260  ;;  %1270 = vrsqrt.f32 %v881_v17 }
 0x586   :  { %v919_v35 = vpack.c.bf16 %v907_v19, %v906_v18  ;;  %v908_v22 = vmul.f32 %v1261_v20, %v1521_v48 }
 0x587   :  { %v1263_v21 = vpop.eup %1262 }
 0x588   :  { %v909_v23 = vmul.f32 %v1263_v21, %v1529_v52  ;;  %v939_v38 = vsel %vm795_vm4, %v919_v35, 0 }
 0x589   :  { %v1265_v24 = vpop.eup %1264  ;;  %1171 = vmatpush3.bf16.xpose.msra.mxu1 %v933_v40 }
 0x58a   :  { %1172 = vmatprep.subr.bf16.mxu1 %v1275_v13  ;;  %v920_v27 = vpack.c.bf16 %v909_v23, %v908_v22  ;;  %v910_v49 = vmul.f32 %v1265_v24, %v1547_v63  ;;  %v798_v63 = vpop.xlane.xlu0 %797 }
 0x58b   :  { %v1267_v30 = vpop.eup %1266  ;;  %v799_v39 = vmax.f32 %v798_v63, 1e-12 }
 0x58c   :  { %v911_v54 = vmul.f32 %v1267_v30, %v1557_v4  ;;  %v942_v4 = vsel %vm795_vm4, %v920_v27, 0 }
 0x58d   :  { %v1269_v31 = vpop.eup %1268  ;;  %1272 = vrsqrt.f32 %v799_v39 }
 0x58e   :  { %v921_v32 = vpack.c.bf16 %v911_v54, %v910_v49  ;;  %v912_v36 = vmul.f32 %v1269_v31, %v1544_v61 }
 0x58f   :  { %v1271_v33 = vpop.eup %1270 }
 0x590   :  { %v913_v48 = vmul.f32 %v1271_v33, %v1553_v2  ;;  %v945_v61 = vsel %vm795_vm4, %v921_v32, 0 }
 0x591   :  { %1173 = vmatpush3.bf16.xpose.msra.mxu1 %v936_v34 }
 0x592   :  { %1174 = vmatprep.subr.bf16.mxu1 %v1275_v13  ;;  %v922_v52 = vpack.c.bf16 %v913_v48, %v912_v36 }
 0x594   :  { %v948_v41 = vsel %vm795_vm4, %v922_v52, 0 }
 0x597   :  { %v1273_v2 = vpop.eup %1272 }
 0x598   :  { %v801_v43 = vmul.f32 %v1273_v2, %v1555_v3 }
 0x599   :  { %1175 = vmatpush3.bf16.xpose.msra.mxu1 %v939_v38 }
 0x59a   :  { %1176 = vmatprep.subr.bf16.mxu1 %v1275_v13  ;;  %v914_v44 = vpack.c.bf16 %v801_v43, %v801_v43 }
 0x5a1   :  { %1177 = vmatpush3.bf16.xpose.msra.mxu1 %v942_v4 }
 0x5a2   :  { %1178 = vmatprep.subr.bf16.mxu1 %v1275_v13 }
 0x5a9   :  { %1179 = vmatpush3.bf16.xpose.msra.mxu1 %v945_v61 }
 0x5aa   :  { %1180 = vmatprep.subr.bf16.mxu1 %v1275_v13 }
 0x5b1   :  { %1181 = vmatpush3.bf16.xpose.msra.mxu1 %v948_v41 }
 0x5b8   :  { %1183 = vmatmul.mubr.msk.bf16.vlgmr.msra.gmra.mrb[20].mxu1 %vm795_vm4, %v914_v44 }
 0x68b   :  { %v984_v45 = vpop.f32.mrb[20].mxu1 }
 0x68c   :  { %990 = vst [vmem:[%s1616_s8] sm:$0xff] %v984_v45  ;;  %v1184_v46 = vpop.f32.mrb[21].mxu1 }
 0x68d   :  { %v987_v47 = vpop.f32.mrb[22].mxu1 }
 0x68e   :  { %v1185_v50 = vpop.f32.mrb[23].mxu1 }

</bundles_post_ra>
